<compile_context>
chip_gen: v7x
topology: tpu7x:2x2x1
jax: 0.10.0
libtpu: 0.0.40
codegen_flags: <defaults>
</compile_context>

<pallas_src>
import jax
import jax.numpy as jnp
from jax import lax
from jax.experimental import pallas as pl
from jax.experimental.pallas import tpu as pltpu

LN_EPS = 1e-12


def _memory_init_kernel(mask_ref, x_ref, w_ref, cellb_ref, ln_w_ref, ln_b_ref,
                        out_ref):
    # mask_ref:  (BN, L, 1)  f32, pre-normalized (each valid row sums to 1)
    # x_ref:     (BN, L, D)  input_states tile (model dtype)
    # w_ref:     (D, D)      Linear weight, untransposed (out, in)
    # cellb_ref: (M, D)      f32, init_memory_bias * W.sum(-1) + fc_bias
    # ln_w_ref:  (1, D)      f32 LayerNorm weight
    # ln_b_ref:  (1, D)      f32 LayerNorm bias
    # out_ref:   (BN, M, D)
    x = x_ref[...]
    m = mask_ref[...]

    # Masked mean-pool over L: the mask already carries 1/valid_len, so one
    # sublane reduce gives the mean.  f32 accumulation via dtype promotion.
    pooled = jnp.sum(x * m, axis=1)                            # (BN, D) f32

    # pooled @ W^T once per batch element; operands in the model dtype
    # (bf16-native MXU on v5e/v6e/v7x), f32 accumulation.
    w = w_ref[...]
    z = lax.dot_general(pooled.astype(w.dtype), w,
                        dimension_numbers=(((1,), (1,)), ((), ())),
                        preferred_element_type=jnp.float32)    # (BN, D)

    # Replicate each row to its M memory cells and add the collapsed per-cell
    # correction on the VPU:  y[b, m] = z[b] + bias_m * W.sum(-1) + fc_bias
    y = z[:, None, :] + cellb_ref[...]                         # (BN, M, D) f32

    # BertLayerNorm (eps inside the sqrt, biased variance), batched over rows.
    u = jnp.mean(y, axis=-1, keepdims=True)
    c = y - u
    s = jnp.mean(c * c, axis=-1, keepdims=True)
    y = c * lax.rsqrt(s + LN_EPS)                              # EUP rsqrt
    y = ln_w_ref[...] * y + ln_b_ref[...]

    out_ref[...] = y.astype(out_ref.dtype)


def _vmem_capacity_bytes():
    """Physical VMEM of the local TPU generation; conservative fallback."""
    try:
        return int(pltpu.get_tpu_info().vmem_capacity_bytes)
    except Exception:
        return 64 << 20          # v7x-class (smallest current generation)


def _choose_batch_tile(N, L, D, M, x_itemsize, w_itemsize, out_itemsize):
    """Pick batch tile BN, grid size G and an explicit VMEM limit.

    Accounts for every block the pipeline keeps resident:
      * x / mask / out tiles (double-buffered by the default pipeline),
      * one f32 temp for the masked product feeding the sublane reduce,
      * the grid-invariant W / per-cell bias / LN params (conservatively
        counted double-buffered as well).
    Targets ~40% of physical VMEM; BN is capped so G >= 2 whenever N >= 2
    (both v7x TensorCores get work on the "parallel" batch axis).
    """
    vmem = _vmem_capacity_bytes()
    budget = (2 * vmem) // 5                        # ~40% of physical VMEM
    per_bn = (2 * L * D * x_itemsize                # x tile, double-buffered
              + 2 * L * 4                           # mask tile (f32), x2
              + 2 * M * D * out_itemsize            # out tile, x2
              + L * D * 4)                          # f32 masked-product temp
    const = 2 * (D * D * w_itemsize                 # W (resident, assume x2)
                 + M * D * 4                        # per-cell bias (f32)
                 + 2 * D * 4)                       # LN weight + bias (f32)
    bn = max(1, min(N, (budget - const) // max(per_bn, 1)))
    if N >= 2:
        bn = min(bn, pl.cdiv(N, 2))                 # G >= 2 for v7x megacore
    grid = pl.cdiv(N, bn)
    vmem_limit = max(32 << 20, vmem // 2)           # explicit scoped-VMEM limit
    return int(bn), int(grid), int(vmem_limit)


def memory_initializer_forward(input_states, attention_mask, params, *,
                               batch_tile=None):
    """input_states: (N, L, D), attention_mask: (N, L) -> (N, M, D)."""
    N, L, D = input_states.shape
    mem_bias = params["init_memory_bias"]                # (1, M, 1)
    M = int(mem_bias.shape[1])
    dtype = input_states.dtype
    W = params["fc_weight"]                              # (D_out, D_in)

    BN, G, vmem_limit = _choose_batch_tile(
        N, L, D, M, input_states.dtype.itemsize, W.dtype.itemsize,
        input_states.dtype.itemsize)
    if batch_tile:
        BN = int(batch_tile)
        G = pl.cdiv(N, BN)

    # Pre-normalized mask (tiny (N, L) op, kept in f32): the in-kernel sum is
    # already the mean; 0/0 -> NaN for all-padding rows like the reference.
    mask_f = attention_mask.astype(jnp.float32)
    mask_norm = (mask_f / jnp.sum(mask_f, axis=1, keepdims=True)
                 ).reshape(N, L, 1)

    # Algebraic collapse of the memory-cell broadcast through the Linear:
    #   (pooled + bias_m) @ W^T + b  ==  pooled @ W^T + bias_m * W.sum(-1) + b
    w_rowsum = jnp.sum(W.astype(jnp.float32), axis=1)                 # (D_out,)
    cell_bias = (mem_bias.reshape(M, 1).astype(jnp.float32) * w_rowsum[None, :]
                 + params["fc_bias"].astype(jnp.float32)[None, :])    # (M, D)

    ln_w = params["ln_weight"].astype(jnp.float32).reshape(1, D)
    ln_b = params["ln_bias"].astype(jnp.float32).reshape(1, D)

    # Note: for narrow-D configs (D < 128, like the toy test) the lane dim is
    # partially masked; real model configs (D = 768/1024) are lane-dense.
    out = pl.pallas_call(
        _memory_init_kernel,
        out_shape=jax.ShapeDtypeStruct((N, M, D), dtype),
        grid=(G,),
        in_specs=[
            pl.BlockSpec((BN, L, 1), lambda g: (g, 0, 0)),   # normalized mask
            pl.BlockSpec((BN, L, D), lambda g: (g, 0, 0)),   # input states
            pl.BlockSpec((D, D), lambda g: (0, 0)),          # fc weight
            pl.BlockSpec((M, D), lambda g: (0, 0)),          # per-cell bias
            pl.BlockSpec((1, D), lambda g: (0, 0)),          # LN weight
            pl.BlockSpec((1, D), lambda g: (0, 0)),          # LN bias
        ],
        out_specs=pl.BlockSpec((BN, M, D), lambda g: (g, 0, 0)),
        compiler_params=pltpu.CompilerParams(
            dimension_semantics=("parallel",),
            vmem_limit_bytes=vmem_limit),
    )(mask_norm, input_states, W, cell_bias, ln_w, ln_b)

    return out


def _reference_forward(input_states, attention_mask, params):
    """Pure-JAX reference mirroring the PyTorch forward (eval mode)."""
    mask = attention_mask.astype(input_states.dtype)
    pooled = jnp.sum(input_states * mask[:, :, None], axis=1)
    pooled = pooled / jnp.sum(mask, axis=1, keepdims=True)
    M = params["init_memory_bias"].shape[1]
    pooled = jnp.repeat(pooled[:, None, :], M, axis=1) + params["init_memory_bias"]
    y = pooled @ params["fc_weight"].T + params["fc_bias"]
    u = jnp.mean(y, axis=-1, keepdims=True)
    s = jnp.mean((y - u) ** 2, axis=-1, keepdims=True)
    y = (y - u) / jnp.sqrt(s + LN_EPS)
    return params["ln_weight"] * y + params["ln_bias"]


if __name__ == "__main__":
    # config: hidden_size=32, n_memory_cells=4; batch N=2, seq L=8
    N, L, D, M = 2, 8, 32, 4

    key = jax.random.PRNGKey(0)
    k_x, k_bias, k_w, k_b = jax.random.split(key, 4)

    input_states = jax.random.normal(k_x, (N, L, D), dtype=jnp.float32)
    # attention mask: first few positions valid, deterministic pattern
    lens = jnp.array([L, L // 2], dtype=jnp.int32)
    attention_mask = (jnp.arange(L)[None, :] < lens[:, None]).astype(jnp.float32)

    params = {
        "init_memory_bias": jax.random.normal(k_bias, (1, M, 1), dtype=jnp.float32),
        "fc_weight": jax.random.normal(k_w, (D, D), dtype=jnp.float32) * 0.02,
        "fc_bias": jax.random.normal(k_b, (D,), dtype=jnp.float32) * 0.02,
        "ln_weight": jnp.ones((D,), dtype=jnp.float32),
        "ln_bias": jnp.zeros((D,), dtype=jnp.float32),
    }

    out = memory_initializer_forward(input_states, attention_mask, params)
    out = jax.block_until_ready(out)

    ref = _reference_forward(input_states, attention_mask, params)
    assert out.shape == (N, M, D)
    assert jnp.allclose(out, ref, atol=1e-5, rtol=1e-5), "mismatch vs reference"

    print("KERNEL_OK")
</pallas_src>

<mosaic_0001>
module attributes {stable_mosaic.version = 11 : i64} {
  func.func @_memory_init_kernel(%arg0: i32, %arg1: memref<1x8x1xf32, #tpu.memory_space<vmem>>, %arg2: memref<1x8x32xf32, #tpu.memory_space<vmem>>, %arg3: memref<32x32xf32, #tpu.memory_space<vmem>>, %arg4: memref<4x32xf32, #tpu.memory_space<vmem>>, %arg5: memref<1x32xf32, #tpu.memory_space<vmem>>, %arg6: memref<1x32xf32, #tpu.memory_space<vmem>>, %arg7: memref<1x4x32xf32, #tpu.memory_space<vmem>>) attributes {dimension_semantics = [#tpu.dimension_semantics<parallel>], iteration_bounds = array<i64: 2>, scalar_prefetch = 0 : i64, scratch_operands = 0 : i64, tpu.core_type = #tpu.core_type<tc>, window_params = [{transform_indices = @transform_0, window_bounds = array<i64: 1, 8, 1>}, {transform_indices = @transform_1, window_bounds = array<i64: 1, 8, 32>}, {pipeline_mode = #tpu.pipeline_mode<synchronous>, transform_indices = @transform_2, window_bounds = array<i64: 32, 32>}, {pipeline_mode = #tpu.pipeline_mode<synchronous>, transform_indices = @transform_3, window_bounds = array<i64: 4, 32>}, {pipeline_mode = #tpu.pipeline_mode<synchronous>, transform_indices = @transform_4, window_bounds = array<i64: 1, 32>}, {pipeline_mode = #tpu.pipeline_mode<synchronous>, transform_indices = @transform_5, window_bounds = array<i64: 1, 32>}, {transform_indices = @transform_6, window_bounds = array<i64: 1, 4, 32>}]} {
    %c0 = arith.constant 0 : index
    %c0_0 = arith.constant 0 : index
    %c0_1 = arith.constant 0 : index
    %0 = vector.load %arg2[%c0, %c0_0, %c0_1] : memref<1x8x32xf32, #tpu.memory_space<vmem>>, vector<1x8x32xf32>
    %c0_2 = arith.constant 0 : index
    %c0_3 = arith.constant 0 : index
    %c0_4 = arith.constant 0 : index
    %1 = vector.load %arg1[%c0_2, %c0_3, %c0_4] : memref<1x8x1xf32, #tpu.memory_space<vmem>>, vector<1x8x1xf32>
    %2 = vector.broadcast %1 : vector<1x8x1xf32> to vector<1x8x32xf32>
    %3 = arith.mulf %0, %2 : vector<1x8x32xf32>
    %cst = arith.constant dense<0.000000e+00> : vector<1x32xf32>
    %4 = vector.multi_reduction <add>, %3, %cst [1] : vector<1x8x32xf32> to vector<1x32xf32>
    %c0_5 = arith.constant 0 : index
    %c0_6 = arith.constant 0 : index
    %5 = vector.load %arg3[%c0_5, %c0_6] : memref<32x32xf32, #tpu.memory_space<vmem>>, vector<32x32xf32>
    %cst_7 = arith.constant dense<0.000000e+00> : vector<1x32xf32>
    %6 = tpu.matmul %4, %5, %cst_7 {dimension_numbers = #tpu.dot_dimension_numbers<[1], [1], [0], [0], [0, 0, 1, 0], [], []>} : vector<1x32xf32>, vector<32x32xf32>, vector<1x32xf32> -> vector<1x32xf32>
    %7 = vector.shape_cast %6 : vector<1x32xf32> to vector<1x1x32xf32>
    %c0_8 = arith.constant 0 : index
    %c0_9 = arith.constant 0 : index
    %8 = vector.load %arg4[%c0_8, %c0_9] : memref<4x32xf32, #tpu.memory_space<vmem>>, vector<4x32xf32>
    %9 = vector.shape_cast %8 : vector<4x32xf32> to vector<1x4x32xf32>
    %10 = vector.broadcast %7 : vector<1x1x32xf32> to vector<1x4x32xf32>
    %11 = arith.addf %10, %9 : vector<1x4x32xf32>
    %cst_10 = arith.constant dense<0.000000e+00> : vector<1x4xf32>
    %12 = vector.multi_reduction <add>, %11, %cst_10 [2] : vector<1x4x32xf32> to vector<1x4xf32>
    %13 = vector.shape_cast %12 : vector<1x4xf32> to vector<1x4x1xf32>
    %cst_11 = arith.constant 3.200000e+01 : f32
    %14 = vector.broadcast %cst_11 : f32 to vector<1x4x1xf32>
    %15 = arith.divf %13, %14 : vector<1x4x1xf32>
    %16 = vector.broadcast %15 : vector<1x4x1xf32> to vector<1x4x32xf32>
    %17 = arith.subf %11, %16 : vector<1x4x32xf32>
    %18 = arith.mulf %17, %17 : vector<1x4x32xf32>
    %cst_12 = arith.constant dense<0.000000e+00> : vector<1x4xf32>
    %19 = vector.multi_reduction <add>, %18, %cst_12 [2] : vector<1x4x32xf32> to vector<1x4xf32>
    %20 = vector.shape_cast %19 : vector<1x4xf32> to vector<1x4x1xf32>
    %cst_13 = arith.constant 3.200000e+01 : f32
    %21 = vector.broadcast %cst_13 : f32 to vector<1x4x1xf32>
    %22 = arith.divf %20, %21 : vector<1x4x1xf32>
    %cst_14 = arith.constant 9.99999996E-13 : f32
    %23 = vector.broadcast %cst_14 : f32 to vector<1x4x1xf32>
    %24 = arith.addf %22, %23 : vector<1x4x1xf32>
    %25 = math.rsqrt %24 : vector<1x4x1xf32>
    %26 = vector.broadcast %25 : vector<1x4x1xf32> to vector<1x4x32xf32>
    %27 = arith.mulf %17, %26 : vector<1x4x32xf32>
    %c0_15 = arith.constant 0 : index
    %c0_16 = arith.constant 0 : index
    %28 = vector.load %arg5[%c0_15, %c0_16] : memref<1x32xf32, #tpu.memory_space<vmem>>, vector<1x32xf32>
    %29 = vector.shape_cast %28 : vector<1x32xf32> to vector<1x1x32xf32>
    %30 = vector.broadcast %29 : vector<1x1x32xf32> to vector<1x4x32xf32>
    %31 = arith.mulf %30, %27 : vector<1x4x32xf32>
    %c0_17 = arith.constant 0 : index
    %c0_18 = arith.constant 0 : index
    %32 = vector.load %arg6[%c0_17, %c0_18] : memref<1x32xf32, #tpu.memory_space<vmem>>, vector<1x32xf32>
    %33 = vector.shape_cast %32 : vector<1x32xf32> to vector<1x1x32xf32>
    %34 = vector.broadcast %33 : vector<1x1x32xf32> to vector<1x4x32xf32>
    %35 = arith.addf %31, %34 : vector<1x4x32xf32>
    %c0_19 = arith.constant 0 : index
    %c0_20 = arith.constant 0 : index
    %c0_21 = arith.constant 0 : index
    %36 = vector.load %arg7[%c0_19, %c0_20, %c0_21] : memref<1x4x32xf32, #tpu.memory_space<vmem>>, vector<1x4x32xf32>
    tpu.vector_store %arg7[%c0_19, %c0_20, %c0_21], %35 {strides = array<i32>} : memref<1x4x32xf32, #tpu.memory_space<vmem>>, vector<1x4x32xf32>,
    return
  }
  func.func @transform_0(%arg0: i32) -> (i32, i32, i32) {
    %c0_i32 = arith.constant 0 : i32
    %c0_i32_0 = arith.constant 0 : i32
    %c0_i32_1 = arith.constant 0 : i32
    return %arg0, %c0_i32, %c0_i32_0 : i32, i32, i32
  }
  func.func @transform_1(%arg0: i32) -> (i32, i32, i32) {
    %c0_i32 = arith.constant 0 : i32
    %c0_i32_0 = arith.constant 0 : i32
    %c0_i32_1 = arith.constant 0 : i32
    return %arg0, %c0_i32, %c0_i32_0 : i32, i32, i32
  }
  func.func @transform_2(%arg0: i32) -> (i32, i32) {
    %c0_i32 = arith.constant 0 : i32
    %c0_i32_0 = arith.constant 0 : i32
    %c0_i32_1 = arith.constant 0 : i32
    return %c0_i32, %c0_i32_0 : i32, i32
  }
  func.func @transform_3(%arg0: i32) -> (i32, i32) {
    %c0_i32 = arith.constant 0 : i32
    %c0_i32_0 = arith.constant 0 : i32
    %c0_i32_1 = arith.constant 0 : i32
    return %c0_i32, %c0_i32_0 : i32, i32
  }
  func.func @transform_4(%arg0: i32) -> (i32, i32) {
    %c0_i32 = arith.constant 0 : i32
    %c0_i32_0 = arith.constant 0 : i32
    %c0_i32_1 = arith.constant 0 : i32
    return %c0_i32, %c0_i32_0 : i32, i32
  }
  func.func @transform_5(%arg0: i32) -> (i32, i32) {
    %c0_i32 = arith.constant 0 : i32
    %c0_i32_0 = arith.constant 0 : i32
    %c0_i32_1 = arith.constant 0 : i32
    return %c0_i32, %c0_i32_0 : i32, i32
  }
  func.func @transform_6(%arg0: i32) -> (i32, i32, i32) {
    %c0_i32 = arith.constant 0 : i32
    %c0_i32_0 = arith.constant 0 : i32
    %c0_i32_1 = arith.constant 0 : i32
    return %arg0, %c0_i32, %c0_i32_0 : i32, i32, i32
  }
}

</mosaic_0001>

<bundles_post_ra>
// kernel: tpu_custom_call.1
= control target key start
LH: loop header
LB: loop body
LE: loop exit
PB: predicated region body
PF: predicated region fallthrough
CT: control target
= control target key end

     0   :  { %11 = vsyncpa [#allocation3], 0  ;;  %s915_s0 = inlined_call_operand.vmem [shape: f32[2,8,1], index: 0, kind: input, shape index: {}]   ;;  %s916_s1 = inlined_call_operand.vmem [shape: f32[2,8,32], index: 1, kind: input, shape index: {}]   ;;  %s917_s2 = inlined_call_operand.hbm [shape: f32[32,32], index: 2, kind: input, shape index: {}]   ;;  %s918_s3 = inlined_call_operand.vmem [shape: f32[4,32], index: 3, kind: input, shape index: {}]   ;;  %s919_s4 = inlined_call_operand.vmem [shape: f32[1,32], index: 4, kind: input, shape index: {}]   ;;  %s920_s5 = inlined_call_operand.vmem [shape: f32[1,32], index: 5, kind: input, shape index: {}]   ;;  %s921_s6 = inlined_call_operand.hbm [shape: f32[2,4,32], index: 6, kind: output, shape index: {}]  }
   0x1   :  { %12 = vsyncpa [#allocation4], 0 }
   0x2   :  { %14 = vsyncpa [#allocation4 + $0x1], 0  ;;  %s761_s21 = smov 0   ;;  %s763_s22 = smov 0  }
   0x3   :  { %s765_s23 = smov 0   ;;  %s767_s24 = smov 0  }
   0x4 LB: > { %s782_s25 = sadd.s32 4294967295, %s716_s24   ;;  %s519_s26 = sadd.s32 4294967294, %s716_s24   ;;  %s716_s24 = sphi %s767_s24, %s937_s24   ;;  %s712_s23 = sphi %s765_s23, %s936_s23   ;;  %s708_s22 = sphi %s763_s22, %s935_s22   ;;  %s704_s21 = sphi %s761_s21, %s934_s21  }
   0x5   : > { %s786_s27 = sadd.s32 1, %s716_s24   ;;  %s163_s28 = sadd.s32 1, %s712_s23 }
   0x6   : > { %s160_s29 = ssub.s32 %s716_s24, %s786_s27  ;;  %p173_p0 = scmp.ne.s32.totalorder %s712_s23, %s708_s22 }
   0x7   : > { %p161_p1 = scmp.eq.s32.totalorder %s160_s29, 0  ;;  %p174_p2 = scmp.eq.s32.totalorder %s782_s25, 1 }
   0x8   : > { %p179_p3 = scmp.ne.s32.totalorder %s708_s22, %s704_s21  ;;  %p180_p4 = scmp.eq.s32.totalorder %s519_s26, 1 }
   0x9   : > { %s797_s30 = scalar_select %p161_p1, %s712_s23, %s163_s28  }
   0xa   : > { %p799_p5 = por %p174_p2, %p173_p0  ;;  %p803_p6 = por %p180_p4, %p179_p3 }
   0xb   : > { %p520_p7 = scmp.ge.s32.totalorder %s716_s24, 1  ;;  %p187_p8 = scmp.lt.s32.totalorder %s716_s24, 3 }
   0xc   : > { %s925_s7 = scalar_select %p799_p5, 1, 0 }
   0xd   : > { %s926_s8 = scalar_select %p803_p6, 1, 0 }
   0xe   : > { %p922_p9 = scmp.eq.s32.totalorder %s782_s25, 0  ;;  %p810_p10 = pnand %p520_p7, %p187_p8 }
   0xf   : > { %s718_s10 = smov [#allocation2]   ;;  %s622_s15 = scalar_lea.hbm %s917_s2, 512 }
  0x10   : > { %s927_s9 = scalar_select %p810_p10, 1, 0 }
  0x11   : > { %s199_s11 = sshll.u32 %s718_s10, 4  ;;  %p569_p11 = pneg %p810_p10  ;;  %s200_s11 = int_to_ptr.vmem [resolvable:$true] %s199_s11 }
  0x12   : > { %p623_p13 = scmp.ne.s32.totalorder %s917_s2, %s622_s15  ;;  %p629_p3 = scmp.lt.u32.totalorder %s622_s15, %s917_s2 }
  0x13   : > { %p818_p12 = pnand %p922_p9, %p569_p11 }
  0x15   : > { %p624_p0 = pneg %p818_p12 }
  0x17   : > { %p625_p1 = pnand %p624_p0, %p623_p13 }
  0x19   : > { %p626_p2 = pneg %p625_p1 }
  0x1b   : > { %p631_p4 = pnand %p629_p3, %p626_p2 }
  0x1d   : > { %634 = shalt.err (!%p631_p4)
}
  0x1e   : > { %s635_s20 = scalar_lea.vmem %s200_s11, 512  ;;  %p643_p9 = scmp.lt.s32.totalorder %s200_s11, %s200_s11 }
  0x1f   : > { %p636_p7 = scmp.ne.s32.totalorder %s200_s11, %s635_s20  ;;  %p644_p6 = scmp.lt.s32.totalorder %s635_s20, %s635_s20 }
  0x21   : > { %p638_p8 = pnand %p636_p7, %p624_p0  ;;  %p645_p5 = por %p644_p6, %p643_p9 }
  0x23   : > { %p639_p11 = pneg %p638_p8 }
  0x25   : > { %p646_p10 = pnand %p645_p5, %p639_p11 }
  0x27   : > { %649 = shalt.err (!%p646_p10)
}
  0x28   : > { %s719_s26 = smov 128   ;;  %s720_s28 = smov 8  }
  0x29   : > { %572 = dma.hbm_to_vmem [thread:$0]  (!%p818_p12), %s917_s2, 512, %s200_s11, [#allocation3], %s719_s26, %s719_s26, %s720_s28  }
  0x2a   : > { %p929_p13 = scmp.ne.s32.totalorder %s927_s9, 0 }
  0x2b   : > { %p930_p1 = scmp.eq.s32.totalorder (!%p929_p13), %s782_s25, 0 }
  0x2c   : > { %238 = sbr.rel (%p929_p13) target bundleno = 745 (0x2e9), region = 44 }
  0x33   : > { %695 = dma.done.wait (%p930_p1), [#allocation3], 512   ;;  %p931_p0 = pmov %p930_p1 }
  0x34   : > { %p271_p5 = scmp.lt.s32.totalorder %s782_s25, 1  ;;  %v721_v0 = vmov 0   ;;  %v722_v1 = vmov 0.0|0.0   ;;  %vm287_vm0 = vcmask 261120   ;;  %v295_v3 = vld [vmem:[#allocation2] sm:$0xff]  ;;  %v296_v4 = vld [vmem:[#allocation2 + $0x8] sm:$0xff]  ;;  %v385_v20 = vlaneseq }
  0x35   : > { %697 = vsyncadd (%p931_p0), [#allocation3], 4294966784  ;;  %619 = vset.pattern.permute.xlu0 %v721_v0  ;;  %555 = vmatprep.subr.bf16.mxu0 %v722_v1  ;;  %v556_v5 = vpack.c.bf16 %v296_v4, %v295_v3  ;;  %v297_v6 = vld [vmem:[#allocation2 + $0x10] sm:$0xff]  ;;  %v298_v7 = vld [vmem:[#allocation2 + $0x18] sm:$0xff]  ;;  %vm723_vm2 = vmmov 0   ;;  %v724_v9 = vmov 0.0  }
  0x36   : > { %s272_s12 = scalar_select %p271_p5, %s782_s25, 1  ;;  %vm557_vm1 = vmpackc.low %vm287_vm0, %vm287_vm0  ;;  %v560_v8 = vpack.c.bf16 %v298_v7, %v297_v6  ;;  %552 = vmatprep.mubr.msk.f32.mxu0 %vm723_vm2, %v724_v9  ;;  %v386_v21 = vshrl.u32 %v385_v20, 7  ;;  %v384_v24 = vld [vmem:[%s918_s3] sm:$0xf]  ;;  %vm390_vm3 = vcmask 257024  }
  0x37   : > { %558 = vmatpush3.bf16.xpose.msk.msra.mxu0 %vm557_vm1, %v556_v5  ;;  %s268_s20 = sand.u32 1, %s708_s22   ;;  %v533_v38 = vld [vmem:[%s919_s4] ss:$0 sm:$0xff]  ;;  %p932_p9 = scmp.ne.s32.totalorder %s925_s7, 0 }
  0x38   : > { %s526_s13 = sshll.u32 %s272_s12, 3  ;;  %559 = vmatprep.subr.bf16.mxu0 %v722_v1  ;;  %v387_v22 = vsub.s32 0, %v386_v21  ;;  %s525_s26 = sshll.u32 %s268_s20, 2  ;;  %v534_v40 = vld [vmem:[%s920_s5] ss:$0 sm:$0xff] }
  0x39   : > { %s274_s9 = scalar_lea.vmem %s915_s0, %s526_s13  ;;  %s278_s17 = scalar_lea.vmem %s916_s1, %s526_s13 }
  0x3a   : > { %v280_v2 = vld [vmem:[%s274_s9] sm:$0xff]  ;;  %s536_s13 = sshll.u32 %s782_s25, 6  ;;  %s270_s14 = scalar_lea.vmem [#allocation5], %s525_s26 }
  0x3b   : > { %283 = vperm.xlu0 %619, %v280_v2   ;;  %v279_v10 = vld [vmem:[%s278_s17] sm:$0xff]  ;;  %s436_s11 = sshll.u32 %s270_s14, 4  ;;  %s872_s16 = scalar_lea.hbm %s921_s6, %s536_s13  ;;  %s874_s11 = int_to_ptr.vmem [resolvable:$true] %s436_s11 }
  0x3c   : > { %s423_s17 = scalar_lea.sflag [#allocation4], %s268_s20  ;;  %s650_s18 = scalar_lea.vmem %s874_s11, 64 }
  0x3d   : > { %p651_p6 = scmp.ne.s32.totalorder %s874_s11, %s650_s18  ;;  %s725_s25 = smov [#allocation5]  }
  0x3e   : > { %s654_s19 = sshll.u32 %s725_s25, 4  ;;  %s655_s19 = int_to_ptr.vmem [resolvable:$false] %s654_s19 }
  0x3f   : > { %562 = vmatpush3.bf16.xpose.msk.msra.mxu0 %vm557_vm1, %v560_v8  ;;  %p652_p10 = pnand %p651_p6, %p932_p9  ;;  %s656_s26 = scalar_lea.vmem %s655_s19, 128 }
  0x40   : > { %p657_p2 = scmp.lt.s32.totalorder %s874_s11, %s655_s19  ;;  %p658_p3 = scmp.lt.s32.totalorder %s656_s26, %s650_s18 }
  0x41   : > { %p653_p12 = pneg %p652_p10 }
  0x42   : > { %p659_p4 = por %p658_p3, %p657_p2 }
  0x44   : > { %p660_p7 = pnand %p659_p4, %p653_p12 }
  0xba   : > { %v284_v11 = vpop.permute.xlu0 %283 }
  0xbb   : > { %v286_v12 = vmul.f32 %v284_v11, %v279_v10 }
  0xbd   : > { %v288_v13 = vsel %vm287_vm0, %v286_v12, 0.0 }
  0xbe   : > { %v289_v14 = vrot.slane %v288_v13, 4 }
  0xc0   : > { %v290_v15 = vadd.f32 %v289_v14, %v288_v13 }
  0xc2   : > { %v291_v16 = vrot.slane %v290_v15, 2 }
  0xc4   : > { %v292_v17 = vadd.f32 %v291_v16, %v290_v15 }
  0xc6   : > { %v293_v18 = vrot.slane %v292_v17, 1 }
  0xc8   : > { %v294_v19 = vadd.f32 %v293_v18, %v292_v17 }
  0xca   : > { %553 = vmatmul.mubr.msk.f32.vlgmr.msra.gmra.mrb[0].mxu0 %vm287_vm0, %v294_v19 }
 0x19d   : > { %v380_v23 = vpop.f32.mrb[0].mxu0 }
 0x19e   : > { %v388_v25 = vrot.slane %v380_v23, %v387_v22  ;;  %v554_v26 = vpop.f32.mrb[1].mxu0 }
 0x1a0   : > { %v389_v27 = vadd.f32 %v388_v25, %v384_v24 }
 0x1a2   : > { %v391_v28 = vsel %vm390_vm3, %v389_v27, 0.0 }
 0x1a3   : > { %392 = vadd.xlane.f32.xlu0 %v391_v28 }
 0x230   : > { %v393_v29 = vpop.xlane.xlu0 %392 }
 0x231   : > { %v395_v30 = vmul.f32 0.03125, %v393_v29 }
 0x233   : > { %v396_v31 = vsub.f32 %v389_v27, %v395_v30 }
 0x235   : > { %v397_v32 = vmul.f32 %v396_v31, %v396_v31 }
 0x237   : > { %v398_v33 = vsel %vm390_vm3, %v397_v32, 0.0 }
 0x238   : > { %399 = vadd.xlane.f32.xlu1 %v398_v33 }
 0x2c5   : > { %v400_v34 = vpop.xlane.xlu1 %399 }
 0x2c6   : > { %v401_v35 = vmul.f32 0.03125, %v400_v34 }
 0x2c8   : > { %v402_v36 = vadd.f32 1e-12, %v401_v35 }
 0x2ca   : > { %620 = vrsqrt.f32 %v402_v36 }
 0x2d4   : > { %v621_v37 = vpop.eup %620 }
 0x2d5   : > { %v404_v39 = vmul.f32 %v621_v37, %v396_v31 }
 0x2d7   : > { %v412_v41 = vmul.f32 %v533_v38, %v404_v39 }
 0x2d9   : > { %v420_v42 = vadd.f32 %v534_v40, %v412_v41 }
 0x2db   : > { %421 = vst.msk [vmem:[%s270_s14] sm:$0xf] %vm390_vm3, %v420_v42 }
 0x2dc   : > { %663 = shalt.err (!%p660_p7)
}
 0x2dd   : > { %s664_s20 = scalar_lea.hbm %s872_s16, 64  ;;  %s668_s10 = scalar_lea.hbm %s921_s6, 128 }
 0x2de   : > { %p665_p8 = scmp.ne.s32.totalorder %s872_s16, %s664_s20  ;;  %p669_p1 = scmp.lt.u32.totalorder %s872_s16, %s921_s6 }
 0x2df   : > { %p670_p0 = scmp.lt.u32.totalorder %s668_s10, %s664_s20  ;;  %p672_p6 = scmp.lt.u32.totalorder %s664_s20, %s872_s16 }
 0x2e0   : > { %p666_p11 = pnand %p665_p8, %p932_p9 }
 0x2e1   : > { %p671_p5 = por %p670_p0, %p669_p1 }
 0x2e2   : > { %p667_p13 = pneg %p666_p11 }
 0x2e3   : > { %p673_p10 = por %p672_p6, %p671_p5 }
 0x2e5   : > { %p674_p12 = pnand %p673_p10, %p667_p13 }
 0x2e7   : > { %677 = shalt.err (!%p674_p12)
}
 0x2e8   : > { %567 = dma.vmem_to_hbm [thread:$0]  (%p932_p9), %s874_s11, 64, %s872_s16, %s423_s17  }
 0x2e9 PF: > { %p579_p2 = scmp.ge.s32.totalorder %s716_s24, 2  ;;  %s448_s14 = sand.u32 1, %s704_s21  }
 0x2ea   : > { %p933_p3 = scmp.ne.s32.totalorder %s926_s8, 0  ;;  %s449_s9 = scalar_lea.sflag [#allocation4], %s448_s14 }
 0x2ec   : > { %p574_p4 = pnand %p579_p2, %p933_p3 }
 0x2ee   : > { %699 = dma.done.wait (!%p574_p4), %s449_s9, 64  }
 0x2ef   : > { %701 = vsyncadd (!%p574_p4), %s449_s9, 4294967232  ;;  %p17_p7 = scmp.ge.s32.totalorder %s786_s27, 4   ;;  %s934_s21 = smov %s708_s22 }
 0x2f0   : > { %s935_s22 = smov %s712_s23  ;;  %s936_s23 = smov %s797_s30 }
 0x2f1   : > { %s937_s24 = smov %s786_s27  ;;  %19 = sbr.rel (!%p17_p7) target bundleno = 4 (0x4), region = 87 }
 0x2f8   :  { %454 = vsyncpa [#allocation3], 1 }
 0x2f9   :  { %456 = vsyncpa [#allocation3 + $0x1], 1 }
 0x2fa   :  { %457 = vsyncpa [#allocation4], 1 }
 0x2fb   :  { %459 = vsyncpa [#allocation4 + $0x1], 1 }

</bundles_post_ra>
